<compile_context>
chip_gen: v7x
topology: tpu7x:2x2x1
jax: 0.10.0
libtpu: 0.0.40
codegen_flags: <defaults>
</compile_context>

<pallas_src>
import jax
import jax.numpy as jnp
from jax.experimental import pallas as pl
from jax.experimental.pallas import tpu as pltpu


def _round_up(x, m):
    return ((x + m - 1) // m) * m


def _cdiv(a, b):
    return (a + b - 1) // b


def _min_sublane(dtype):
    # Minimum second-to-last tile dim by dtype packing: f32->8, bf16->16, 8-bit->32.
    return {4: 8, 2: 16, 1: 32}.get(jnp.dtype(dtype).itemsize, 8)


def _kernel_direct(x_ref, w_ref, b_ref, o_ref):
    """f32-output path: accumulate straight into the resident output tile."""
    k = pl.program_id(2)

    @pl.when(k == 0)
    def _init():
        # Bias (with the scalar `other` already folded in) seeds the
        # accumulator, so the finalize branch is just the relu.
        o_ref[...] = jnp.broadcast_to(b_ref[...], o_ref.shape)

    o_ref[...] += jnp.dot(x_ref[...], w_ref[...],
                          preferred_element_type=jnp.float32)

    @pl.when(k == pl.num_programs(2) - 1)
    def _finalize():
        o_ref[...] = jnp.maximum(o_ref[...], 0.0)


def _kernel_scratch(x_ref, w_ref, b_ref, o_ref, acc_ref):
    """Narrow-output path: f32 VMEM accumulator, cast once in the epilogue."""
    k = pl.program_id(2)

    @pl.when(k == 0)
    def _init():
        acc_ref[...] = jnp.broadcast_to(b_ref[...], acc_ref.shape)

    acc_ref[...] += jnp.dot(x_ref[...], w_ref[...],
                            preferred_element_type=jnp.float32)

    @pl.when(k == pl.num_programs(2) - 1)
    def _finalize():
        o_ref[...] = jnp.maximum(acc_ref[...], 0.0).astype(o_ref.dtype)


def linear_sub_relu(x, w, b, other, *, tm=512, tn=512, tk=1024,
                    compute_dtype=None, force_pallas=False):
    """relu(flatten(x, 1) @ w + (b - other)) with w: (K, N), b: (N,)."""
    B = x.shape[0]
    x2 = x.reshape(B, -1)                      # flatten(1) (no-op for 2-D input)
    M, K = x2.shape
    K2, N = w.shape
    assert K == K2

    out_dtype = x2.dtype

    # Fold the scalar `other` into the bias, KEPT IN f32 so a low-precision b
    # doesn't re-round (matches the reference, which subtracts after the matmul).
    b_f32 = b.astype(jnp.float32) - jnp.asarray(other, jnp.float32).reshape(())

    # Optional bf16 compute path: small-batch Linear is W-bandwidth bound, so
    # halving HBM bytes (and using the faster bf16 MXU path) is the big lever.
    if compute_dtype is not None:
        x2 = x2.astype(compute_dtype)
        w = w.astype(compute_dtype)

    # Small-problem fallback: for tiny shapes, (8,128) padding plus grid/DMA
    # setup dominates and plain XLA fusion is strictly faster.
    if not force_pallas and 2 * M * K * N < 10_000_000:
        y = jnp.dot(x2, w, preferred_element_type=jnp.float32) + b_f32
        return jnp.maximum(y, 0.0).astype(out_dtype)

    sub = _min_sublane(x2.dtype)

    # Lane-dense, packing-aligned tiles, clamped so small dims give one block.
    tm = min(tm, _round_up(M, sub))
    tn = min(tn, _round_up(N, 128))
    tk = min(tk, _round_up(K, 128))

    # Megacore guard (v7x has 2 TensorCores): if the parallel (i, j) grid
    # collapses to a single block and N allows it, halve tn so both cores work.
    n128 = _round_up(N, 128)
    if _cdiv(M, tm) * _cdiv(N, tn) < 2 and n128 >= 256:
        tn = min(tn, _round_up(_cdiv(n128, 2), 128))

    M_p = _round_up(M, tm)
    N_p = _round_up(N, tn)
    K_p = _round_up(K, tk)

    # Zero-pad to tile multiples: padded K contributes 0 to the dot, padded N
    # columns see bias 0 -> relu(0) = 0 and are sliced off below.
    x_p = x2 if (M_p, K_p) == (M, K) else jnp.pad(x2, ((0, M_p - M), (0, K_p - K)))
    w_p = w if (K_p, N_p) == (K, N) else jnp.pad(w, ((0, K_p - K), (0, N_p - N)))
    b_p = b_f32.reshape(1, N)
    if N_p != N:
        b_p = jnp.pad(b_p, ((0, 0), (0, N_p - N)))

    gi, gj, gk = M_p // tm, N_p // tn, K_p // tk
    grid = (gi, gj, gk)

    x_bytes = jnp.dtype(x2.dtype).itemsize
    w_bytes = jnp.dtype(w.dtype).itemsize
    o_bytes = jnp.dtype(out_dtype).itemsize
    cost = pl.CostEstimate(
        flops=2 * M_p * K_p * N_p,
        transcendentals=0,
        # Account for re-streaming with the (i, j, k) grid order: x row-panels
        # are re-read gj times, W column-panels gi times, output written once.
        bytes_accessed=(gj * M_p * K_p * x_bytes + gi * K_p * N_p * w_bytes
                        + N_p * 4 + M_p * N_p * o_bytes),
    )

    direct = out_dtype == jnp.float32
    kernel = _kernel_direct if direct else _kernel_scratch
    scratch = [] if direct else [pltpu.VMEM((tm, tn), jnp.float32)]

    out_p = pl.pallas_call(
        kernel,
        out_shape=jax.ShapeDtypeStruct((M_p, N_p), out_dtype),
        grid_spec=pltpu.PrefetchScalarGridSpec(
            num_scalar_prefetch=0,
            grid=grid,
            # Grid order (i, j, k): for the typical skinny-batch Linear
            # (gi == 1) the weight matrix — the dominant HBM stream — is read
            # exactly once, which is the mem-bound optimum.
            in_specs=[
                pl.BlockSpec((tm, tk), lambda i, j, k: (i, k)),   # x tile
                pl.BlockSpec((tk, tn), lambda i, j, k: (k, j)),   # W tile
                pl.BlockSpec((1, tn), lambda i, j, k: (0, j)),    # folded bias
            ],
            out_specs=pl.BlockSpec((tm, tn), lambda i, j, k: (i, j)),
            scratch_shapes=scratch,
        ),
        compiler_params=pltpu.CompilerParams(
            # M/N shard across TensorCores; K is the reduction axis.
            dimension_semantics=("parallel", "parallel", "arbitrary"),
            # ~11 MiB at tm=tn=512, tk=1024 f32 (double-buffered inputs +
            # resident output tile): fits the 32 MiB scoped budget, which is
            # safe on v5e/v6e (128 MiB VMEM) and on v7x (64 MiB physical).
            vmem_limit_bytes=32 * 1024 * 1024,
        ),
        cost_estimate=cost,
    )(x_p, w_p, b_p)

    return out_p[:M, :N]


def reference(x, w, b, other):
    return jnp.maximum(x.reshape(x.shape[0], -1) @ w + b - other, 0.0)


if __name__ == "__main__":
    key = jax.random.PRNGKey(0)
    kx, kw, kb, kx2, kw2, kb2 = jax.random.split(key, 6)

    # Shape implied by the module: Linear(4, 6), small batch.
    B, K, N = 2, 4, 6
    x1 = jax.random.normal(kx, (B, K), dtype=jnp.float32)
    bound = 1.0 / (K ** 0.5)  # PyTorch-like uniform init bound
    w = jax.random.uniform(kw, (K, N), minval=-bound, maxval=bound, dtype=jnp.float32)
    b = jax.random.uniform(kb, (N,), minval=-bound, maxval=bound, dtype=jnp.float32)
    other = jnp.array(1.5, dtype=jnp.float32)

    # Force the Pallas path so the kernel itself is exercised at this toy size
    # (the auto-dispatch would otherwise hand it to plain XLA fusion).
    out = jax.block_until_ready(linear_sub_relu(x1, w, b, other, force_pallas=True))
    ref = reference(x1, w, b, other)
    assert out.shape == (B, N)
    assert jnp.allclose(out, ref, atol=1e-5, rtol=1e-5)

    # MXU-scale shape to exercise the real tiled (i, j, k) pipeline + megacore guard.
    M2, K2, N2 = 256, 512, 640
    x2 = jax.random.normal(kx2, (M2, K2), dtype=jnp.float32)
    w2 = jax.random.normal(kw2, (K2, N2), dtype=jnp.float32) * (1.0 / K2 ** 0.5)
    b2 = jax.random.normal(kb2, (N2,), dtype=jnp.float32)
    out2 = jax.block_until_ready(linear_sub_relu(x2, w2, b2, other))
    ref2 = reference(x2, w2, b2, other)
    assert out2.shape == (M2, N2)
    assert jnp.allclose(out2, ref2, atol=1e-3, rtol=1e-3)

    print("KERNEL_OK")
</pallas_src>

<mosaic_0001>
module attributes {stable_mosaic.version = 11 : i64} {
  func.func @_kernel_direct(%arg0: i32, %arg1: i32, %arg2: i32, %arg3: memref<8x128xf32, #tpu.memory_space<vmem>>, %arg4: memref<128x128xf32, #tpu.memory_space<vmem>>, %arg5: memref<1x128xf32, #tpu.memory_space<vmem>>, %arg6: memref<8x128xf32, #tpu.memory_space<vmem>>) attributes {dimension_semantics = [#tpu.dimension_semantics<parallel>, #tpu.dimension_semantics<parallel>, #tpu.dimension_semantics<arbitrary>], iteration_bounds = array<i64: 1, 1, 1>, scalar_prefetch = 0 : i64, scratch_operands = 0 : i64, tpu.core_type = #tpu.core_type<tc>, window_params = [{transform_indices = @transform_0, window_bounds = array<i64: 8, 128>}, {transform_indices = @transform_1, window_bounds = array<i64: 128, 128>}, {transform_indices = @transform_2, window_bounds = array<i64: 1, 128>}, {transform_indices = @transform_3, window_bounds = array<i64: 8, 128>}]} {
    %c0_i32 = arith.constant 0 : i32
    %0 = arith.cmpi eq, %arg2, %c0_i32 : i32
    %1 = arith.extui %0 : i1 to i32
    %c0_i32_0 = arith.constant 0 : i32
    %2 = arith.cmpi ne, %1, %c0_i32_0 : i32
    scf.if %2 {
      %c0_10 = arith.constant 0 : index
      %c0_11 = arith.constant 0 : index
      %12 = vector.load %arg5[%c0_10, %c0_11] : memref<1x128xf32, #tpu.memory_space<vmem>>, vector<1x128xf32>
      %13 = vector.shape_cast %12 : vector<1x128xf32> to vector<1x128xf32>
      %14 = vector.broadcast %13 : vector<1x128xf32> to vector<8x128xf32>
      %c0_12 = arith.constant 0 : index
      %c0_13 = arith.constant 0 : index
      %15 = vector.load %arg6[%c0_12, %c0_13] : memref<8x128xf32, #tpu.memory_space<vmem>>, vector<8x128xf32>
      tpu.vector_store %arg6[%c0_12, %c0_13], %14 {strides = array<i32>} : memref<8x128xf32, #tpu.memory_space<vmem>>, vector<8x128xf32>,
    } else {
    }
    %c0 = arith.constant 0 : index
    %c0_1 = arith.constant 0 : index
    %3 = vector.load %arg6[%c0, %c0_1] : memref<8x128xf32, #tpu.memory_space<vmem>>, vector<8x128xf32>
    %c0_2 = arith.constant 0 : index
    %c0_3 = arith.constant 0 : index
    %4 = vector.load %arg3[%c0_2, %c0_3] : memref<8x128xf32, #tpu.memory_space<vmem>>, vector<8x128xf32>
    %c0_4 = arith.constant 0 : index
    %c0_5 = arith.constant 0 : index
    %5 = vector.load %arg4[%c0_4, %c0_5] : memref<128x128xf32, #tpu.memory_space<vmem>>, vector<128x128xf32>
    %cst = arith.constant dense<0.000000e+00> : vector<8x128xf32>
    %6 = tpu.matmul %4, %5, %cst {dimension_numbers = #tpu.dot_dimension_numbers<[1], [0], [0], [1], [0, 0, 1, 1], [], []>} : vector<8x128xf32>, vector<128x128xf32>, vector<8x128xf32> -> vector<8x128xf32>
    %7 = arith.addf %3, %6 : vector<8x128xf32>
    %c0_6 = arith.constant 0 : index
    %c0_7 = arith.constant 0 : index
    %8 = vector.load %arg6[%c0_6, %c0_7] : memref<8x128xf32, #tpu.memory_space<vmem>>, vector<8x128xf32>
    tpu.vector_store %arg6[%c0_6, %c0_7], %7 {strides = array<i32>} : memref<8x128xf32, #tpu.memory_space<vmem>>, vector<8x128xf32>,
    %c0_i32_8 = arith.constant 0 : i32
    %9 = arith.cmpi eq, %arg2, %c0_i32_8 : i32
    %10 = arith.extui %9 : i1 to i32
    %c0_i32_9 = arith.constant 0 : i32
    %11 = arith.cmpi ne, %10, %c0_i32_9 : i32
    scf.if %11 {
      %c0_10 = arith.constant 0 : index
      %c0_11 = arith.constant 0 : index
      %12 = vector.load %arg6[%c0_10, %c0_11] : memref<8x128xf32, #tpu.memory_space<vmem>>, vector<8x128xf32>
      %cst_12 = arith.constant 0.000000e+00 : f32
      %13 = vector.broadcast %cst_12 : f32 to vector<8x128xf32>
      %14 = arith.maximumf %12, %13 : vector<8x128xf32>
      %c0_13 = arith.constant 0 : index
      %c0_14 = arith.constant 0 : index
      %15 = vector.load %arg6[%c0_13, %c0_14] : memref<8x128xf32, #tpu.memory_space<vmem>>, vector<8x128xf32>
      tpu.vector_store %arg6[%c0_13, %c0_14], %14 {strides = array<i32>} : memref<8x128xf32, #tpu.memory_space<vmem>>, vector<8x128xf32>,
    } else {
    }
    return
  }
  func.func @transform_0(%arg0: i32, %arg1: i32, %arg2: i32) -> (i32, i32) {
    %c0_i32 = arith.constant 0 : i32
    return %arg0, %arg2 : i32, i32
  }
  func.func @transform_1(%arg0: i32, %arg1: i32, %arg2: i32) -> (i32, i32) {
    %c0_i32 = arith.constant 0 : i32
    return %arg2, %arg1 : i32, i32
  }
  func.func @transform_2(%arg0: i32, %arg1: i32, %arg2: i32) -> (i32, i32) {
    %c0_i32 = arith.constant 0 : i32
    %c0_i32_0 = arith.constant 0 : i32
    return %c0_i32, %arg1 : i32, i32
  }
  func.func @transform_3(%arg0: i32, %arg1: i32, %arg2: i32) -> (i32, i32) {
    %c0_i32 = arith.constant 0 : i32
    return %arg0, %arg1 : i32, i32
  }
}

</mosaic_0001>

<bundles_post_ra>
// kernel: tpu_custom_call.1
= control target key start
LH: loop header
LB: loop body
LE: loop exit
PB: predicated region body
PF: predicated region fallthrough
CT: control target
= control target key end

     0   :  { %8 = vsyncpa [#allocation3], 0  ;;  %s396_s0 = inlined_call_operand.hbm [shape: f32[8,128], index: 0, kind: input, shape index: {}]   ;;  %s397_s1 = inlined_call_operand.hbm [shape: f32[128,128], index: 1, kind: input, shape index: {}]   ;;  %s398_s2 = inlined_call_operand.vmem [shape: f32[1,128], index: 2, kind: input, shape index: {}]   ;;  %s399_s3 = inlined_call_operand.hbm [shape: f32[8,128], index: 3, kind: output, shape index: {}]  }
   0x1   :  { %9 = vsyncpa [#allocation6], 0 }
   0x2   :  { %10 = vsyncpa [#allocation4], 0  ;;  %s322_s12 = smov [#allocation2]   ;;  %s323_s14 = smov [#allocation5]  }
   0x3   :  { %s17_s13 = sshll.u32 %s322_s12, 4  ;;  %s26_s15 = sshll.u32 %s323_s14, 4  ;;  %s18_s13 = int_to_ptr.vmem [resolvable:$true] %s17_s13  ;;  %s350_s15 = int_to_ptr.vmem [resolvable:$true] %s26_s15 }
   0x4   :  { %s250_s18 = scalar_lea.hbm %s396_s0, 128 }
   0x5   :  { %p251_p0 = scmp.ne.s32.totalorder %s396_s0, %s250_s18  ;;  %p254_p1 = scmp.lt.u32.totalorder %s250_s18, %s396_s0 }
   0x7   :  { %p256_p2 = pnand %p254_p1, %p251_p0 }
   0x9   :  { %259 = shalt.err (!%p256_p2)
}
   0xa   :  { %s260_s23 = scalar_lea.vmem %s18_s13, 128  ;;  %p265_p4 = scmp.lt.s32.totalorder %s18_s13, %s18_s13 }
   0xb   :  { %p261_p3 = scmp.ne.s32.totalorder %s18_s13, %s260_s23  ;;  %p266_p5 = scmp.lt.s32.totalorder %s260_s23, %s260_s23 }
   0xd   :  { %p267_p6 = por %p266_p5, %p265_p4 }
   0xf   :  { %p268_p7 = pnand %p267_p6, %p261_p3 }
  0x11   :  { %271 = shalt.err (!%p268_p7)
}
  0x12   :  { %20 = dma.hbm_to_vmem [thread:$0]  %s396_s0, 128, %s18_s13, [#allocation3]  }
  0x13   :  { %s272_s28 = scalar_lea.hbm %s397_s1, 2048 }
  0x14   :  { %p273_p8 = scmp.ne.s32.totalorder %s397_s1, %s272_s28  ;;  %p276_p9 = scmp.lt.u32.totalorder %s272_s28, %s397_s1 }
  0x16   :  { %p278_p10 = pnand %p276_p9, %p273_p8 }
  0x18   :  { %281 = shalt.err (!%p278_p10)
}
  0x19   :  { %s282_s6 = scalar_lea.vmem %s350_s15, 2048  ;;  %p287_p12 = scmp.lt.s32.totalorder %s350_s15, %s350_s15 }
  0x1a   :  { %p283_p11 = scmp.ne.s32.totalorder %s350_s15, %s282_s6  ;;  %p288_p13 = scmp.lt.s32.totalorder %s282_s6, %s282_s6 }
  0x1c   :  { %p289_p0 = por %p288_p13, %p287_p12 }
  0x1e   :  { %p290_p1 = pnand %p289_p0, %p283_p11 }
  0x20   :  { %293 = shalt.err (!%p290_p1)
}
  0x21   :  { %s324_s0 = smov 128   ;;  %s325_s7 = smov 8  }
  0x22   :  { %32 = dma.hbm_to_vmem [thread:$0]  %s397_s1, 2048, %s350_s15, [#allocation6], %s324_s0, %s324_s0, %s325_s7  }
  0x23   :  { %316 = dma.done.wait [#allocation3], 128  }
  0x24   :  { %317 = vsyncadd [#allocation3], 4294967168 }
  0x25   :  { %318 = dma.done.wait [#allocation6], 2048  }
  0x26   :  { %319 = vsyncadd [#allocation6], 4294965248  ;;  %v326_v0 = vmov 0.0|0.0   ;;  %vm327_vm0 = vmmov 0   ;;  %v328_v1 = vmov 0.0   ;;  %v55_v2 = vld [vmem:[#allocation5] sm:$0xff] }
  0x27   :  { %218 = vmatprep.subr.bf16.mxu0 %v326_v0  ;;  %215 = vmatprep.mubr.msk.f32.mxu0 %vm327_vm0, %v328_v1  ;;  %v56_v3 = vld [vmem:[#allocation5 + $0x8] sm:$0xff]  ;;  %v57_v4 = vld [vmem:[#allocation5 + $0x10] sm:$0xff]  ;;  %v58_v6 = vld [vmem:[#allocation5 + $0x18] sm:$0xff]  ;;  %s329_s11 = smov [#allocation7]  }
  0x28   :  { %v219_v5 = vpack.c.bf16 %v56_v3, %v55_v2  ;;  %v222_v7 = vpack.c.bf16 %v58_v6, %v57_v4  ;;  %v59_v8 = vld [vmem:[#allocation5 + $0x20] sm:$0xff]  ;;  %v60_v9 = vld [vmem:[#allocation5 + $0x28] sm:$0xff]  ;;  %v61_v11 = vld [vmem:[#allocation5 + $0x30] sm:$0xff]  ;;  %s155_s12 = sshll.u32 %s329_s11, 4  ;;  %s156_s12 = int_to_ptr.vmem [resolvable:$true] %s155_s12 }
  0x29   :  { %v225_v10 = vpack.c.bf16 %v60_v9, %v59_v8  ;;  %v62_v12 = vld [vmem:[#allocation5 + $0x38] sm:$0xff]  ;;  %v63_v14 = vld [vmem:[#allocation5 + $0x40] sm:$0xff]  ;;  %v64_v15 = vld [vmem:[#allocation5 + $0x48] sm:$0xff]  ;;  %s294_s13 = scalar_lea.vmem %s156_s12, 128  ;;  %p299_p3 = scmp.lt.s32.totalorder %s156_s12, %s156_s12 }
  0x2a   :  { %220 = vmatpush3.bf16.msra.mxu0 %v219_v5  ;;  %v228_v13 = vpack.c.bf16 %v62_v12, %v61_v11  ;;  %v231_v16 = vpack.c.bf16 %v64_v15, %v63_v14  ;;  %v65_v17 = vld [vmem:[#allocation5 + $0x50] sm:$0xff]  ;;  %v66_v18 = vld [vmem:[#allocation5 + $0x58] sm:$0xff]  ;;  %v67_v20 = vld [vmem:[#allocation5 + $0x60] sm:$0xff]  ;;  %p295_p2 = scmp.ne.s32.totalorder %s156_s12, %s294_s13  ;;  %p300_p4 = scmp.lt.s32.totalorder %s294_s13, %s294_s13 }
  0x2b   :  { %221 = vmatprep.subr.bf16.mxu0 %v326_v0  ;;  %v234_v19 = vpack.c.bf16 %v66_v18, %v65_v17  ;;  %v68_v21 = vld [vmem:[#allocation5 + $0x68] sm:$0xff]  ;;  %v69_v23 = vld [vmem:[#allocation5 + $0x70] sm:$0xff]  ;;  %v70_v24 = vld [vmem:[#allocation5 + $0x78] sm:$0xff] }
  0x2c   :  { %v237_v22 = vpack.c.bf16 %v68_v21, %v67_v20  ;;  %v240_v25 = vpack.c.bf16 %v70_v24, %v69_v23  ;;  %v54_v26 = vld [vmem:[#allocation2] sm:$0xff]  ;;  %p301_p5 = por %p300_p4, %p299_p3 }
  0x2d   :  { %v165_v27 = vld [vmem:[%s398_s2] ss:$0 sm:$0xff] }
  0x2e   :  { %223 = vmatpush3.bf16.msra.mxu0 %v222_v7  ;;  %p302_p6 = pnand %p301_p5, %p295_p2 }
  0x2f   :  { %224 = vmatprep.subr.bf16.mxu0 %v326_v0 }
  0x32   :  { %226 = vmatpush3.bf16.msra.mxu0 %v225_v10 }
  0x33   :  { %227 = vmatprep.subr.bf16.mxu0 %v326_v0 }
  0x36   :  { %229 = vmatpush3.bf16.msra.mxu0 %v228_v13 }
  0x37   :  { %230 = vmatprep.subr.bf16.mxu0 %v326_v0 }
  0x3a   :  { %232 = vmatpush3.bf16.msra.mxu0 %v231_v16 }
  0x3b   :  { %233 = vmatprep.subr.bf16.mxu0 %v326_v0 }
  0x3e   :  { %235 = vmatpush3.bf16.msra.mxu0 %v234_v19 }
  0x3f   :  { %236 = vmatprep.subr.bf16.mxu0 %v326_v0 }
  0x42   :  { %238 = vmatpush3.bf16.msra.mxu0 %v237_v22 }
  0x43   :  { %239 = vmatprep.subr.bf16.mxu0 %v326_v0 }
  0x46   :  { %241 = vmatpush3.bf16.msra.mxu0 %v240_v25 }
  0x49   :  { %216 = vmatmul.mubr.f32.vlgmr.msra.gmra.mrb[0].mxu0 %v54_v26 }
 0x11c   :  { %v137_v28 = vpop.f32.mrb[0].mxu0 }
 0x11d   :  { %v141_v29 = vadd.f32 %v165_v27, %v137_v28  ;;  %v217_v30 = vpop.f32.mrb[1].mxu0 }
 0x11f   :  { %v147_v31 = vmax.f32 %v141_v29, 0.0 }
 0x121   :  { %148 = vst [vmem:[#allocation7] sm:$0xff] %v147_v31 }
 0x122   :  { %305 = shalt.err (!%p302_p6)
}
 0x123   :  { %s306_s16 = scalar_lea.hbm %s399_s3, 128 }
 0x124   :  { %p307_p7 = scmp.ne.s32.totalorder %s399_s3, %s306_s16  ;;  %p310_p8 = scmp.lt.u32.totalorder %s306_s16, %s399_s3 }
 0x126   :  { %p312_p9 = pnand %p310_p8, %p307_p7 }
 0x128   :  { %315 = shalt.err (!%p312_p9)
}
 0x129   :  { %158 = dma.vmem_to_hbm [thread:$0]  %s156_s12, 128, %s399_s3, [#allocation4]  }
 0x12a   :  { %320 = dma.done.wait [#allocation4], 128  }
 0x12b   :  { %321 = vsyncadd [#allocation4], 4294967168 }
 0x12c   :  { %162 = vsyncpa [#allocation3], 1 }
 0x12d   :  { %163 = vsyncpa [#allocation6], 1 }
 0x12e   :  { %164 = vsyncpa [#allocation4], 1 }

</bundles_post_ra>
